<compile_context>
chip_gen: v6e
topology: v6e:2x2x1
jax: 0.10.0
libtpu: 0.0.40
codegen_flags: <defaults>
</compile_context>

<pallas_src>
import functools

import jax
import jax.numpy as jnp
from jax import lax
from jax.experimental import pallas as pl
from jax.experimental.pallas import tpu as pltpu

BN_EPS = 1e-5
LANE = 128      # vreg lane width
SUBLANE = 8     # vreg sublane height (f32)


def fc_bn_relu_kernel(x_ref, w_ref, gamma_ref, beta_ref, o_ref, *, n_valid):
    """Single-tile fused Linear + BatchNorm1d(train) + ReLU.

    x_ref:     (Np, Cin_p)   bf16  (zero-padded rows/cols)
    w_ref:     (Cin_p, Cout_p) bf16 (pre-transposed, zero-padded)
    gamma_ref: (1, Cout_p)   f32
    beta_ref:  (1, Cout_p)   f32
    o_ref:     (Np, Cout_p)  f32   (lane-dense: Cout_p % 128 == 0)
    n_valid:   true (unpadded) batch size used for BN statistics.
    """
    # Linear (no bias): bf16 MXU matmul, f32 accumulation.
    y = jnp.dot(x_ref[...], w_ref[...],
                preferred_element_type=jnp.float32)        # (Np, Cout_p) f32

    # BatchNorm1d over the batch axis, training-mode (biased) statistics.
    # Padded batch rows are all-zero, so they contribute nothing to the sums;
    # dividing by n_valid gives the statistics of the real batch only.
    inv_n = jnp.float32(1.0 / n_valid)
    s = jnp.sum(y, axis=0, keepdims=True)                  # (1, Cout_p)
    ss = jnp.sum(y * y, axis=0, keepdims=True)             # (1, Cout_p)
    mean = s * inv_n
    var = jnp.maximum(ss * inv_n - mean * mean, 0.0)       # guard tiny negatives

    # Fold gamma into a single per-channel scale; rsqrt goes to the EUP slot.
    scale = gamma_ref[...] * lax.rsqrt(var + BN_EPS)        # (1, Cout_p)
    shift = beta_ref[...] - mean * scale                    # (1, Cout_p)

    out = jnp.maximum(y * scale + shift, 0.0)               # BN + ReLU
    o_ref[...] = out.astype(o_ref.dtype)


def _rpad(a, axis, multiple):
    pad = (-a.shape[axis]) % multiple
    if pad == 0:
        return a
    widths = [(0, 0)] * a.ndim
    widths[axis] = (0, pad)
    return jnp.pad(a, widths)


def fc_forward(x, weight, gamma, beta):
    """Forward pass of FC(in_channels, out_channels, relu=True, bn=True).

    x:      (N, C_in)  f32
    weight: (C_out, C_in) f32  (PyTorch nn.Linear layout)
    gamma:  (C_out,)   f32
    beta:   (C_out,)   f32
    returns (N, C_out) f32
    """
    N, C_in = x.shape
    C_out = weight.shape[0]

    # Pad to lane/sublane-friendly shapes (zeros don't affect matmul / BN sums)
    # and cast matmul inputs to bf16 for the fast MXU path.
    xp = _rpad(_rpad(x, 0, SUBLANE), 1, LANE).astype(jnp.bfloat16)       # (Np, Cin_p)
    wt = _rpad(_rpad(weight.T, 0, LANE), 1, LANE).astype(jnp.bfloat16)   # (Cin_p, Cout_p)
    gp = _rpad(gamma.reshape(1, -1).astype(jnp.float32), 1, LANE)        # (1, Cout_p)
    bp = _rpad(beta.reshape(1, -1).astype(jnp.float32), 1, LANE)         # (1, Cout_p)

    Np, Cin_p = xp.shape
    Cout_p = wt.shape[1]

    # Everything stays VMEM-resident for this (single grid point) kernel.
    vmem_bytes = (xp.size * 2 + wt.size * 2 + gp.size * 4 + bp.size * 4
                  + Np * Cout_p * 4)
    assert vmem_bytes < (12 << 20), (
        "FC problem too large for the single-tile kernel; "
        "needs the tiled two-phase BN variant.")

    vmem = pltpu.MemorySpace.VMEM
    out = pl.pallas_call(
        functools.partial(fc_bn_relu_kernel, n_valid=N),
        out_shape=jax.ShapeDtypeStruct((Np, Cout_p), jnp.float32),
        in_specs=[
            pl.BlockSpec(memory_space=vmem),
            pl.BlockSpec(memory_space=vmem),
            pl.BlockSpec(memory_space=vmem),
            pl.BlockSpec(memory_space=vmem),
        ],
        out_specs=pl.BlockSpec(memory_space=vmem),
        cost_estimate=pl.CostEstimate(
            flops=2 * Np * Cin_p * Cout_p,
            transcendentals=0,
            bytes_accessed=xp.size * 2 + wt.size * 2 + Np * Cout_p * 4,
        ),
    )(xp, wt, gp, bp)

    return out[:N, :C_out]


def reference_forward(x, weight, gamma, beta):
    """Pure-JAX reference of the same forward (with matching bf16 MXU inputs)."""
    xb = x.astype(jnp.bfloat16).astype(jnp.float32)
    wb = weight.astype(jnp.bfloat16).astype(jnp.float32)
    y = xb @ wb.T
    mean = jnp.mean(y, axis=0, keepdims=True)
    var = jnp.mean((y - mean) ** 2, axis=0, keepdims=True)
    y = (y - mean) / jnp.sqrt(var + BN_EPS)
    y = y * gamma.reshape(1, -1) + beta.reshape(1, -1)
    return jnp.maximum(y, 0.0)


if __name__ == "__main__":
    key = jax.random.PRNGKey(0)
    N, C_in, C_out = 16, 32, 64

    k_x, k_w = jax.random.split(key)
    x = jax.random.normal(k_x, (N, C_in), dtype=jnp.float32)

    # init_uniform-style deterministic weight init (xavier-like uniform bound)
    bound = (6.0 / (C_in + C_out)) ** 0.5
    weight = jax.random.uniform(k_w, (C_out, C_in), minval=-bound, maxval=bound,
                                dtype=jnp.float32)

    # init_bn: gamma = 1, beta = 0
    gamma = jnp.ones((C_out,), dtype=jnp.float32)
    beta = jnp.zeros((C_out,), dtype=jnp.float32)

    out = fc_forward(x, weight, gamma, beta)
    out = jax.block_until_ready(out)

    ref = reference_forward(x, weight, gamma, beta)
    assert out.shape == (N, C_out)
    assert jnp.allclose(out, ref, atol=1e-3, rtol=1e-3), "mismatch vs reference"

    print("KERNEL_OK")
</pallas_src>

<mosaic_0001>
module attributes {stable_mosaic.version = 11 : i64} {
  func.func @fc_bn_relu_kernel(%arg0: memref<16x128xbf16, #tpu.memory_space<vmem>>, %arg1: memref<128x128xbf16, #tpu.memory_space<vmem>>, %arg2: memref<1x128xf32, #tpu.memory_space<vmem>>, %arg3: memref<1x128xf32, #tpu.memory_space<vmem>>, %arg4: memref<16x128xf32, #tpu.memory_space<vmem>>) attributes {dimension_semantics = [], scalar_prefetch = 0 : i64, scratch_operands = 0 : i64, tpu.core_type = #tpu.core_type<tc>} {
    %c0 = arith.constant 0 : index
    %c0_0 = arith.constant 0 : index
    %0 = vector.load %arg0[%c0, %c0_0] : memref<16x128xbf16, #tpu.memory_space<vmem>>, vector<16x128xbf16>
    %c0_1 = arith.constant 0 : index
    %c0_2 = arith.constant 0 : index
    %1 = vector.load %arg1[%c0_1, %c0_2] : memref<128x128xbf16, #tpu.memory_space<vmem>>, vector<128x128xbf16>
    %cst = arith.constant dense<0.000000e+00> : vector<16x128xf32>
    %2 = tpu.matmul %0, %1, %cst {dimension_numbers = #tpu.dot_dimension_numbers<[1], [0], [0], [1], [0, 0, 1, 1], [], []>} : vector<16x128xbf16>, vector<128x128xbf16>, vector<16x128xf32> -> vector<16x128xf32>
    %cst_3 = arith.constant dense<0.000000e+00> : vector<128xf32>
    %3 = vector.multi_reduction <add>, %2, %cst_3 [0] : vector<16x128xf32> to vector<128xf32>
    %4 = vector.shape_cast %3 : vector<128xf32> to vector<1x128xf32>
    %5 = arith.mulf %2, %2 : vector<16x128xf32>
    %cst_4 = arith.constant dense<0.000000e+00> : vector<128xf32>
    %6 = vector.multi_reduction <add>, %5, %cst_4 [0] : vector<16x128xf32> to vector<128xf32>
    %7 = vector.shape_cast %6 : vector<128xf32> to vector<1x128xf32>
    %cst_5 = arith.constant 6.250000e-02 : f32
    %8 = vector.broadcast %cst_5 : f32 to vector<1x128xf32>
    %9 = arith.mulf %4, %8 : vector<1x128xf32>
    %cst_6 = arith.constant 6.250000e-02 : f32
    %10 = vector.broadcast %cst_6 : f32 to vector<1x128xf32>
    %11 = arith.mulf %7, %10 : vector<1x128xf32>
    %12 = arith.mulf %9, %9 : vector<1x128xf32>
    %13 = arith.subf %11, %12 : vector<1x128xf32>
    %cst_7 = arith.constant 0.000000e+00 : f32
    %14 = vector.broadcast %cst_7 : f32 to vector<1x128xf32>
    %15 = arith.maximumf %13, %14 : vector<1x128xf32>
    %c0_8 = arith.constant 0 : index
    %c0_9 = arith.constant 0 : index
    %16 = vector.load %arg2[%c0_8, %c0_9] : memref<1x128xf32, #tpu.memory_space<vmem>>, vector<1x128xf32>
    %cst_10 = arith.constant 9.99999974E-6 : f32
    %17 = vector.broadcast %cst_10 : f32 to vector<1x128xf32>
    %18 = arith.addf %15, %17 : vector<1x128xf32>
    %19 = math.rsqrt %18 : vector<1x128xf32>
    %20 = arith.mulf %16, %19 : vector<1x128xf32>
    %c0_11 = arith.constant 0 : index
    %c0_12 = arith.constant 0 : index
    %21 = vector.load %arg3[%c0_11, %c0_12] : memref<1x128xf32, #tpu.memory_space<vmem>>, vector<1x128xf32>
    %22 = arith.mulf %9, %20 : vector<1x128xf32>
    %23 = arith.subf %21, %22 : vector<1x128xf32>
    %24 = vector.broadcast %20 : vector<1x128xf32> to vector<16x128xf32>
    %25 = arith.mulf %2, %24 : vector<16x128xf32>
    %26 = vector.broadcast %23 : vector<1x128xf32> to vector<16x128xf32>
    %27 = arith.addf %25, %26 : vector<16x128xf32>
    %cst_13 = arith.constant 0.000000e+00 : f32
    %28 = vector.broadcast %cst_13 : f32 to vector<16x128xf32>
    %29 = arith.maximumf %27, %28 : vector<16x128xf32>
    %c0_14 = arith.constant 0 : index
    %c0_15 = arith.constant 0 : index
    %30 = vector.load %arg4[%c0_14, %c0_15] : memref<16x128xf32, #tpu.memory_space<vmem>>, vector<16x128xf32>
    tpu.vector_store %arg4[%c0_14, %c0_15], %29 {strides = array<i32>} : memref<16x128xf32, #tpu.memory_space<vmem>>, vector<16x128xf32>,
    return
  }
}

</mosaic_0001>

<bundles_post_ra>
// kernel: tpu_custom_call.1
= control target key start
LH: loop header
LB: loop body
LE: loop exit
PB: predicated region body
PF: predicated region fallthrough
CT: control target
= control target key end

     0   :  { %9 = vsyncpa [#allocation3], 0  ;;  %s399_s0 = inlined_call_operand.hbm [shape: bf16[16,128], index: 0, kind: input, shape index: {}]   ;;  %s400_s1 = inlined_call_operand.hbm [shape: bf16[128,128], index: 1, kind: input, shape index: {}]   ;;  %s401_s2 = inlined_call_operand.vmem [shape: f32[1,128], index: 2, kind: input, shape index: {}]   ;;  %s402_s3 = inlined_call_operand.vmem [shape: f32[1,128], index: 3, kind: input, shape index: {}]   ;;  %s403_s4 = inlined_call_operand.hbm [shape: f32[16,128], index: 4, kind: output, shape index: {}]  }
   0x1   :  { %10 = vsyncpa [#allocation6], 0 }
   0x2   :  { %11 = vsyncpa [#allocation4], 0  ;;  %s350_s15 = smov [#allocation2]  }
   0x3   :  { %s17_s16 = sshll.u32 %s350_s15, 4  ;;  %s18_s16 = int_to_ptr.vmem [resolvable:$true] %s17_s16 }
   0x4   :  { %s292_s17 = scalar_lea.vmem %s18_s16, 128  ;;  %p297_p1 = scmp.lt.s32.totalorder %s18_s16, %s18_s16 }
   0x5   :  { %p293_p0 = scmp.ne.s32.totalorder %s18_s16, %s292_s17  ;;  %p298_p2 = scmp.lt.s32.totalorder %s292_s17, %s292_s17 }
   0x7   :  { %p299_p3 = por %p298_p2, %p297_p1 }
   0x9   :  { %p300_p4 = pnand %p299_p3, %p293_p0 }
   0xb   :  { %303 = shalt.err (!%p300_p4)
}
   0xc   :  { %s351_s18 = smov 64   ;;  %s352_s19 = smov 4  }
   0xd   :  { %23 = dma.hbm_to_vmem [thread:$0]  %s399_s0, 128, %s18_s16, [#allocation3], %s351_s18, %s351_s18, %s352_s19  }
   0xe   :  { %s353_s22 = smov [#allocation5]  }
   0xf   :  { %s29_s23 = sshll.u32 %s353_s22, 4  ;;  %s30_s23 = int_to_ptr.vmem [resolvable:$true] %s29_s23 }
  0x10   :  { %s312_s24 = scalar_lea.vmem %s30_s23, 1024  ;;  %p317_p6 = scmp.lt.s32.totalorder %s30_s23, %s30_s23 }
  0x11   :  { %p313_p5 = scmp.ne.s32.totalorder %s30_s23, %s312_s24  ;;  %p318_p7 = scmp.lt.s32.totalorder %s312_s24, %s312_s24 }
  0x13   :  { %p319_p8 = por %p318_p7, %p317_p6 }
  0x15   :  { %p320_p9 = pnand %p319_p8, %p313_p5 }
  0x17   :  { %323 = shalt.err (!%p320_p9)
}
  0x18   :  { %35 = dma.hbm_to_vmem [thread:$0]  %s400_s1, 1024, %s30_s23, [#allocation6], %s351_s18, %s351_s18, %s352_s19  }
  0x19   :  { %344 = dma.done.wait [#allocation3], 128  }
  0x1a   :  { %345 = vsyncadd [#allocation3], 4294967168 }
  0x1b   :  { %346 = dma.done.wait [#allocation6], 1024  }
  0x1c   :  { %347 = vsyncadd [#allocation6], 4294966272  ;;  %v354_v0 = vmov 0.0   ;;  %vm355_vm0 = vmmov 0   ;;  %v273_v1 = vld [vmem:[#allocation5 + $0x38] sm:$0xff]   ;;  %v274_v2 = vld [vmem:[#allocation5 + $0x30] sm:$0xff]   ;;  %v189_v36 = vlaneseq }
  0x1d   :  { %244 = vmatprep.subr.bf16.mxu0 %v354_v0  ;;  %260 = vmatprep.mubr.msk.bf16.mxu0 %vm355_vm0, %v354_v0  ;;  %v275_v3 = vld [vmem:[#allocation5 + $0x28] sm:$0xff]   ;;  %v276_v4 = vld [vmem:[#allocation5 + $0x20] sm:$0xff]   ;;  %v277_v5 = vld [vmem:[#allocation5 + $0x18] sm:$0xff]   ;;  %s356_s29 = smov [#allocation7]  }
  0x1e   :  { %245 = vmatpush3.bf16.msra.mxu0 %v273_v1  ;;  %v278_v6 = vld [vmem:[#allocation5 + $0x10] sm:$0xff]   ;;  %v279_v7 = vld [vmem:[#allocation5 + $0x8] sm:$0xff]   ;;  %v280_v8 = vld [vmem:[#allocation5] sm:$0xff]   ;;  %v190_v37 = vshrl.u32 %v189_v36, 7  ;;  %s213_s30 = sshll.u32 %s356_s29, 4  ;;  %s214_s30 = int_to_ptr.vmem [resolvable:$true] %s213_s30 }
  0x1f   :  { %246 = vmatprep.subr.bf16.mxu0 %v354_v0  ;;  %v281_v9 = vld [vmem:[#allocation2] sm:$0xff]   ;;  %p329_p11 = scmp.lt.s32.totalorder %s214_s30, %s214_s30 }
  0x20   :  { %v181_v38 = vld [vmem:[%s401_s2] sm:$0x1]  ;;  %v191_v39 = vsub.s32 0, %v190_v37  ;;  %s324_s2 = scalar_lea.vmem %s214_s30, 256 }
  0x21   :  { %v185_v42 = vld [vmem:[%s402_s3] sm:$0x1]  ;;  %p325_p10 = scmp.ne.s32.totalorder %s214_s30, %s324_s2  ;;  %p330_p12 = scmp.lt.s32.totalorder %s324_s2, %s324_s2 }
  0x22   :  { %247 = vmatpush3.bf16.msra.mxu0 %v274_v2 }
  0x23   :  { %248 = vmatprep.subr.bf16.mxu0 %v354_v0  ;;  %p331_p13 = por %p330_p12, %p329_p11 }
  0x25   :  { %p332_p0 = pnand %p331_p13, %p325_p10 }
  0x26   :  { %249 = vmatpush3.bf16.msra.mxu0 %v275_v3 }
  0x27   :  { %250 = vmatprep.subr.bf16.mxu0 %v354_v0 }
  0x2a   :  { %251 = vmatpush3.bf16.msra.mxu0 %v276_v4 }
  0x2b   :  { %252 = vmatprep.subr.bf16.mxu0 %v354_v0 }
  0x2e   :  { %253 = vmatpush3.bf16.msra.mxu0 %v277_v5 }
  0x2f   :  { %254 = vmatprep.subr.bf16.mxu0 %v354_v0 }
  0x32   :  { %255 = vmatpush3.bf16.msra.mxu0 %v278_v6 }
  0x33   :  { %256 = vmatprep.subr.bf16.mxu0 %v354_v0 }
  0x36   :  { %257 = vmatpush3.bf16.msra.mxu0 %v279_v7 }
  0x37   :  { %258 = vmatprep.subr.bf16.mxu0 %v354_v0 }
  0x3a   :  { %259 = vmatpush3.bf16.msra.mxu0 %v280_v8 }
  0x3d   :  { %261 = vmatmul.mubr.bf16.vlgmr.msra.gmra.mxu0 %v281_v9 }
  0xfd   :  { %v153_v10 = vpop.f32.mrf.mxu0 }
  0xfe   :  { %v167_v13 = vmul.f32 %v153_v10, %v153_v10 }
  0xff   :  { %v262_v11 = vpop.f32.mrf.mxu0 }
 0x101   :  { %v156_v12 = vpop.f32.mrf.mxu0 }
 0x102   :  { %v160_v14 = vadd.f32 %v156_v12, %v153_v10  ;;  %v168_v15 = vmul.f32 %v156_v12, %v156_v12 }
 0x103   :  { %v263_v16 = vpop.f32.mrf.mxu0 }
 0x104   :  { %v161_v17 = vrot.slane %v160_v14, 4  ;;  %v169_v18 = vadd.f32 %v168_v15, %v167_v13 }
 0x106   :  { %v162_v19 = vadd.f32 %v161_v17, %v160_v14  ;;  %v170_v20 = vrot.slane %v169_v18, 4 }
 0x108   :  { %v163_v21 = vrot.slane %v162_v19, 2  ;;  %v171_v22 = vadd.f32 %v170_v20, %v169_v18 }
 0x10a   :  { %v164_v23 = vadd.f32 %v163_v21, %v162_v19  ;;  %v172_v24 = vrot.slane %v171_v22, 2 }
 0x10c   :  { %v165_v25 = vrot.slane %v164_v23, 1  ;;  %v173_v26 = vadd.f32 %v172_v24, %v171_v22 }
 0x10e   :  { %v166_v27 = vadd.f32 %v165_v25, %v164_v23  ;;  %v174_v28 = vrot.slane %v173_v26, 1 }
 0x110   :  { %v175_v29 = vadd.f32 %v174_v28, %v173_v26  ;;  %v176_v30 = vmul.f32 0.0625, %v166_v27 }
 0x112   :  { %v177_v31 = vmul.f32 0.0625, %v175_v29  ;;  %v178_v32 = vmul.f32 %v176_v30, %v176_v30 }
 0x114   :  { %v179_v33 = vsub.f32 %v177_v31, %v178_v32 }
 0x116   :  { %v180_v34 = vmax.f32 %v179_v33, 0.0 }
 0x118   :  { %v182_v35 = vadd.f32 1e-05, %v180_v34 }
 0x11a   :  { %282 = vrsqrt.f32 %v182_v35 }
 0x127   :  { %v283_v40 = vpop.eup %282 }
 0x128   :  { %v184_v41 = vmul.f32 %v283_v40, %v181_v38 }
 0x12a   :  { %v186_v43 = vmul.f32 %v184_v41, %v176_v30  ;;  %v192_v44 = vrot.slane %v184_v41, %v191_v39 }
 0x12c   :  { %v187_v45 = vsub.f32 %v185_v42, %v186_v43  ;;  %v194_v46 = vmul.f32 %v192_v44, %v153_v10  ;;  %v195_v47 = vmul.f32 %v192_v44, %v156_v12 }
 0x12e   :  { %v200_v48 = vrot.slane %v187_v45, %v191_v39 }
 0x130   :  { %v202_v49 = vadd.f32 %v200_v48, %v194_v46  ;;  %v203_v50 = vadd.f32 %v200_v48, %v195_v47 }
 0x132   :  { %v204_v51 = vmax.f32 %v202_v49, 0.0  ;;  %v205_v52 = vmax.f32 %v203_v50, 0.0 }
 0x134   :  { %207 = vst [vmem:[#allocation7 + $0x8] sm:$0xff] %v205_v52  ;;  %206 = vst [vmem:[#allocation7] sm:$0xff] %v204_v51 }
 0x135   :  { %335 = shalt.err (!%p332_p0)
}
 0x136   :  { %s357_s3 = smov 128   ;;  %s358_s5 = smov 8  }
 0x137   :  { %219 = dma.vmem_to_hbm [thread:$0]  %s214_s30, 256, %s403_s4, [#allocation4], %s357_s3, %s357_s3, %s358_s5  }
 0x138   :  { %348 = dma.done.wait [#allocation4], 256  }
 0x139   :  { %349 = vsyncadd [#allocation4], 4294967040 }
 0x13a   :  { %223 = vsyncpa [#allocation3], 1 }
 0x13b   :  { %224 = vsyncpa [#allocation6], 1 }
 0x13c   :  { %225 = vsyncpa [#allocation4], 1 }

</bundles_post_ra>
